<compile_context>
chip_gen: v6e
topology: v6e:2x2x1
jax: 0.10.0
libtpu: 0.0.40
codegen_flags: <defaults>
</compile_context>

<pallas_src>
import jax
import jax.numpy as jnp
from jax.experimental import pallas as pl
from jax.experimental.pallas import tpu as pltpu


# ----------------------------------------------------------------------------- kernels

def _resize_kernel(x_ref, ah_ref, awt_ref, o_ref):
    # x: (1, H, W) bf16 raw pixels; ah: (Hm, H) bf16; awt: (W, Wm) bf16
    # -> o: (1, Hm, Wm) bf16.  Two chained bf16 MXU matmuls, f32 accumulation.
    t = jnp.dot(ah_ref[...], x_ref[0], preferred_element_type=jnp.float32)
    o_ref[0] = jnp.dot(t.astype(jnp.bfloat16), awt_ref[...],
                       preferred_element_type=jnp.float32).astype(o_ref.dtype)


def _fnet_kernel(p_ref, w_ref, b_ref, o_ref):
    # p: (tm, K) bf16 pixel patches; w: (K, C) bf16 with the 2*(x/255)-1 affine folded
    # in; b: (1, C) f32 folded bias.  Output (tm, C) bf16, channel L2-normalized in f32.
    h = jnp.dot(p_ref[...], w_ref[...], preferred_element_type=jnp.float32) + b_ref[...]
    ss = jnp.sum(h * h, axis=-1, keepdims=True)
    o_ref[...] = (h * jax.lax.rsqrt(jnp.maximum(ss, 1e-24))).astype(o_ref.dtype)


def _sample_kernel(wy_ref, wx_ref, f_ref, o_ref):
    # Separable bilinear sampling in the fmap's natural NHWC layout (no transpose):
    #   out[p, c] = sum_i wy[p, i] * (wx[p, :] @ f[i, :, c])
    # wy: (1, P, Hf) f32, wx: (1, P, Wf) bf16, f: (Hf, Wf, C) bf16 (one batch),
    # o: (1, P, C) f32 (also used as the VMEM accumulator).
    P, Hf = wy_ref.shape[1], wy_ref.shape[2]
    o_ref[0] = jnp.zeros(o_ref.shape[1:], o_ref.dtype)

    def body(i, carry):
        col = jnp.dot(wx_ref[0], f_ref[i],
                      preferred_element_type=jnp.float32)           # (P, C) on the MXU
        lane_idx = jax.lax.broadcasted_iota(jnp.int32, (P, Hf), 1)
        w_i = jnp.sum(jnp.where(lane_idx == i, wy_ref[0], 0.0),
                      axis=1, keepdims=True)                         # (P, 1) row weight
        o_ref[0] += w_i * col
        return carry

    jax.lax.fori_loop(0, Hf, body, 0, unroll=(Hf <= 8))


# ----------------------------------------------------------------------------- wrappers

def _interp_matrix(out_size, in_size):
    # align_corners=True bilinear interpolation weights, shape (out_size, in_size)
    if in_size == 1:
        return jnp.ones((out_size, 1), jnp.float32)
    if out_size == 1:
        pos = jnp.zeros((1,), jnp.float32)
    else:
        pos = jnp.arange(out_size, dtype=jnp.float32) * (in_size - 1) / (out_size - 1)
    i0 = jnp.clip(jnp.floor(pos).astype(jnp.int32), 0, in_size - 2)
    frac = pos - i0.astype(jnp.float32)
    rows = jnp.arange(out_size)
    A = jnp.zeros((out_size, in_size), jnp.float32)
    A = A.at[rows, i0].add(1.0 - frac)
    A = A.at[rows, i0 + 1].add(frac)
    return A


def bilinear_resize(frame, out_h, out_w):
    # frame: (B, C, H, W) -> (B, C, out_h, out_w) bf16; grid over B*C (parallel).
    B, C, H, W = frame.shape
    ah = _interp_matrix(out_h, H).astype(jnp.bfloat16)        # (out_h, H)
    awt = _interp_matrix(out_w, W).T.astype(jnp.bfloat16)     # (W, out_w)
    x = frame.astype(jnp.bfloat16).reshape(B * C, H, W)       # half-width DMA, free view
    out = pl.pallas_call(
        _resize_kernel,
        out_shape=jax.ShapeDtypeStruct((B * C, out_h, out_w), jnp.bfloat16),
        grid=(B * C,),
        in_specs=[pl.BlockSpec((1, H, W), lambda i: (i, 0, 0)),
                  pl.BlockSpec((out_h, H), lambda i: (0, 0)),
                  pl.BlockSpec((W, out_w), lambda i: (0, 0))],
        out_specs=pl.BlockSpec((1, out_h, out_w), lambda i: (i, 0, 0)),
        compiler_params=pltpu.CompilerParams(dimension_semantics=("parallel",)),
    )(x, ah, awt)
    return out.reshape(B, C, out_h, out_w)


def _pick_row_tile(m, target=2048):
    # largest multiple-of-8 divisor of m that is <= target (fallback: whole extent)
    if m <= target:
        return m
    for t in range(target, 7, -8):
        if m % t == 0:
            return t
    return m


def fnet_forward(frame_resized_bf16, w_bf16, b_f32, stride, latent_dim):
    # frame_resized_bf16: (B, 3, Hm, Wm) raw [0,255] pixels in bf16; the frame
    # normalization and bias are folded into w/b.  Returns (B, Hf, Wf, C) bf16 NHWC.
    B, C, Hm, Wm = frame_resized_bf16.shape
    Hf, Wf = Hm // stride, Wm // stride
    K = C * stride * stride
    # im2col for a kernel==stride conv (non-overlapping patches) -- tiny host-side glue.
    p = frame_resized_bf16.reshape(B, C, Hf, stride, Wf, stride)
    p = p.transpose(0, 2, 4, 1, 3, 5).reshape(B * Hf * Wf, K)        # batch folded into M
    M = B * Hf * Wf
    tm = _pick_row_tile(M)
    out = pl.pallas_call(
        _fnet_kernel,
        out_shape=jax.ShapeDtypeStruct((M, latent_dim), jnp.bfloat16),
        grid=(M // tm,),
        in_specs=[pl.BlockSpec((tm, K), lambda i: (i, 0)),
                  pl.BlockSpec((K, latent_dim), lambda i: (0, 0)),
                  pl.BlockSpec((1, latent_dim), lambda i: (0, 0))],
        out_specs=pl.BlockSpec((tm, latent_dim), lambda i: (i, 0)),
        compiler_params=pltpu.CompilerParams(dimension_semantics=("parallel",)),
    )(p, w_bf16, b_f32)
    return out.reshape(B, Hf, Wf, latent_dim)


def avg_pool2x2_nhwc(x):
    # matches F.avg_pool2d(x, 2, stride=2) (floor of odd dims), NHWC bf16 layout
    B, H, W, C = x.shape
    H2, W2 = H // 2, W // 2
    x = x[:, : H2 * 2, : W2 * 2].astype(jnp.float32)
    return x.reshape(B, H2, 2, W2, 2, C).mean(axis=(2, 4)).astype(jnp.bfloat16)


def _lin_weights(pos, size):
    # pos: (B, P) float positions -> (B, P, size) 1-D interpolation weights with zero
    # weight for out-of-bounds corners (grid_sample zero padding semantics).
    p0 = jnp.floor(pos)
    frac = pos - p0
    grid = jnp.arange(size, dtype=jnp.float32)[None, None, :]
    p0e = p0[..., None]
    w = jnp.where(grid == p0e, (1.0 - frac)[..., None], 0.0)
    w = w + jnp.where(grid == p0e + 1.0, frac[..., None], 0.0)
    return w.astype(jnp.float32)


def sample_support_features(fmap_nhwc, points_xy, radius):
    # bilinear sampling of a (2r+1)x(2r+1) support grid around each query point.
    B, Hf, Wf, C = fmap_nhwc.shape
    N = points_xy.shape[1]
    offs = jnp.arange(-radius, radius + 1, dtype=jnp.float32)
    dy, dx = jnp.meshgrid(offs, offs, indexing="ij")          # support ordered dy-major
    S = dx.size
    px = (points_xy[:, :, None, 0] + dx.ravel()[None, None, :]).reshape(B, N * S)
    py = (points_xy[:, :, None, 1] + dy.ravel()[None, None, :]).reshape(B, N * S)
    P = N * S
    wx = _lin_weights(px, Wf).astype(jnp.bfloat16)            # (B, P, Wf) MXU operand
    wy = _lin_weights(py, Hf)                                 # (B, P, Hf) f32 row scales
    f3 = fmap_nhwc.reshape(B * Hf, Wf, C)                     # free view, natural layout
    out = pl.pallas_call(
        _sample_kernel,
        out_shape=jax.ShapeDtypeStruct((B, P, C), jnp.float32),
        grid=(B,),
        in_specs=[pl.BlockSpec((1, P, Hf), lambda b: (b, 0, 0)),
                  pl.BlockSpec((1, P, Wf), lambda b: (b, 0, 0)),
                  pl.BlockSpec((Hf, Wf, C), lambda b: (b, 0, 0))],
        out_specs=pl.BlockSpec((1, P, C), lambda b: (b, 0, 0)),
        compiler_params=pltpu.CompilerParams(dimension_semantics=("parallel",)),
    )(wy, wx, f3)
    return out                                                # rows ordered n-major, s-minor


# ----------------------------------------------------------------------------- predictor

class CoTrackerRealTimePredictorPallas:
    """JAX/Pallas re-implementation of CoTrackerRealTimePredictor (first-frame path)."""

    def __init__(self, window_len=8, stride=4, corr_radius=3, corr_levels=3,
                 latent_dim=128, model_resolution=(32, 48)):
        # NOTE: the real model uses corr_levels=4 and model_resolution=(384, 512);
        # spatial sizes reduced here, latent_dim kept at the real 128 (lane-dense).
        self.window_len = window_len
        self.stride = stride
        self.corr_radius = corr_radius
        self.corr_levels = corr_levels
        self.latent_dim = latent_dim
        self.interp_shape = model_resolution
        self.visibility_threshold = 0.6
        # synthetic, deterministic fnet parameters (stride-4 patch-embedding conv),
        # with the frame normalization 2*(x/255)-1 folded into the weights/bias.
        kw, kb = jax.random.split(jax.random.PRNGKey(0))
        K = 3 * stride * stride
        w0 = (jax.random.normal(kw, (K, latent_dim)) * 0.1).astype(jnp.float32)
        b0 = (jax.random.normal(kb, (1, latent_dim)) * 0.01).astype(jnp.float32)
        self.fnet_w = ((2.0 / 255.0) * w0).astype(jnp.bfloat16)          # bf16 MXU operand
        self.fnet_b = (b0 - jnp.sum(w0, axis=0, keepdims=True)).astype(jnp.float32)
        self.reset()

    def reset(self):
        self.is_first_frame = True
        self.fmaps_pyramid = None
        self.track_feat_support_pyramid = None
        self.coords = None
        self.vis = None
        self.conf = None

    # ---- CoTrackerThreeRealTime.forward (first-frame branch) ----
    def _model_forward(self, frame, queries):
        B, _, H, W = frame.shape
        if not (H % self.stride == 0 and W % self.stride == 0 and self.window_len >= 2):
            raise ValueError("Invalid input parameters")
        if self.coords is None and queries is None:
            return None, None, None

        # fnet (folded frame normalization) + channel L2-normalization, one Pallas kernel
        fmap = fnet_forward(frame, self.fnet_w, self.fnet_b, self.stride, self.latent_dim)

        if self.is_first_frame:
            # Store ONE bf16 copy per pyramid level; on the first frame all window_len
            # slots are identical, so the (B, window_len, ...) broadcast is never
            # materialized (pure HBM-bandwidth waste at real resolution).
            self.fmaps_pyramid = []
            curr = fmap
            for i in range(self.corr_levels):
                level = curr if i == 0 else avg_pool2x2_nhwc(curr)
                curr = level
                self.fmaps_pyramid.append(level)                  # (B, Hf, Wf, C) bf16
            if queries is not None:
                _, N, _ = queries.shape
                q = queries / self.stride
                self.vis = jnp.ones((B, self.window_len, N, 1), jnp.float32) * 10.0
                self.conf = jnp.ones((B, self.window_len, N, 1), jnp.float32) * 10.0
                self.coords = jnp.broadcast_to(q[:, None], (B, self.window_len, N, 2))
                self.track_feat_support_pyramid = []
                Ssup = (2 * self.corr_radius + 1) ** 2
                for i in range(self.corr_levels):
                    lvl = self.fmaps_pyramid[i]                   # last window slot
                    feats = sample_support_features(lvl, q / (2 ** i), self.corr_radius)
                    feats = feats.reshape(B, N, Ssup, self.latent_dim)
                    feats = feats.transpose(0, 2, 1, 3)[:, None]  # (B, 1, Ssup, N, C)
                    self.track_feat_support_pyramid.append(feats)
            self.is_first_frame = False
        else:
            # TODO(synk): non-first-frame path requires CoTrackerThreeOnline.forward_window
            # (iterative transformer refinement), which is not provided in the reference.
            raise NotImplementedError("forward_window path not available")

        return (
            self.coords[:, -1] * self.stride,
            jax.nn.sigmoid(self.vis[:, -1]),
            jax.nn.sigmoid(self.conf[:, -1]),
        )

    # ---- CoTrackerRealTimePredictor.forward ----
    def __call__(self, frame, queries=None):
        H, W = frame.shape[-2:]
        mh, mw = self.interp_shape
        frame_resized = bilinear_resize(frame, mh, mw)            # (B, 3, mh, mw) bf16
        if queries is not None:
            scale_to_model = jnp.array(
                [(mw - 1) / (W - 1), (mh - 1) / (H - 1)], jnp.float32
            )
            queries = queries.astype(jnp.float32) * scale_to_model
        tracks, vis, conf = self._model_forward(frame_resized, queries)
        if tracks is None:
            return None, None
        scale_to_orig = jnp.array(
            [(W - 1) / (mw - 1), (H - 1) / (mh - 1)], jnp.float32
        )
        tracks = tracks * scale_to_orig
        visibles = (vis * conf) > self.visibility_threshold
        return tracks, visibles


# ----------------------------------------------------------------------------- main

if __name__ == "__main__":
    key = jax.random.PRNGKey(0)
    k_frame, k_q = jax.random.split(key)

    B, C, H, W = 2, 3, 24, 36
    N = 5
    frame = jax.random.uniform(k_frame, (B, C, H, W), jnp.float32) * 255.0
    queries = jax.random.uniform(k_q, (B, N, 2), jnp.float32) * jnp.array(
        [W - 1, H - 1], jnp.float32
    )  # (x, y) in original resolution

    predictor = CoTrackerRealTimePredictorPallas(window_len=8)
    predictor.reset()
    tracks, visibles = predictor(frame, queries)

    jax.block_until_ready(tracks)
    jax.block_until_ready(visibles)

    assert tracks.shape == (B, N, 2)
    assert visibles.shape == (B, N, 1)
    # on the first frame coords are exactly the queries and vis/conf logits are 10,
    # so tracks round-trip back to the original query coordinates.
    assert jnp.allclose(tracks, queries, atol=1e-3)
    assert bool(jnp.all(visibles))

    print("KERNEL_OK")
</pallas_src>

<mosaic_0001>
module attributes {stable_mosaic.version = 11 : i64} {
  func.func @_resize_kernel(%arg0: i32, %arg1: memref<1x24x36xbf16, #tpu.memory_space<vmem>>, %arg2: memref<32x24xbf16, #tpu.memory_space<vmem>>, %arg3: memref<36x48xbf16, #tpu.memory_space<vmem>>, %arg4: memref<1x32x48xbf16, #tpu.memory_space<vmem>>) attributes {dimension_semantics = [#tpu.dimension_semantics<parallel>], iteration_bounds = array<i64: 6>, scalar_prefetch = 0 : i64, scratch_operands = 0 : i64, tpu.core_type = #tpu.core_type<tc>, window_params = [{transform_indices = @transform_0, window_bounds = array<i64: 1, 24, 36>}, {pipeline_mode = #tpu.pipeline_mode<synchronous>, transform_indices = @transform_1, window_bounds = array<i64: 32, 24>}, {pipeline_mode = #tpu.pipeline_mode<synchronous>, transform_indices = @transform_2, window_bounds = array<i64: 36, 48>}, {transform_indices = @transform_3, window_bounds = array<i64: 1, 32, 48>}]} {
    %c0 = arith.constant 0 : index
    %c0_0 = arith.constant 0 : index
    %0 = vector.load %arg2[%c0, %c0_0] : memref<32x24xbf16, #tpu.memory_space<vmem>>, vector<32x24xbf16>
    %c0_1 = arith.constant 0 : index
    %c0_2 = arith.constant 0 : index
    %c0_3 = arith.constant 0 : index
    %1 = vector.load %arg1[%c0_1, %c0_2, %c0_3] : memref<1x24x36xbf16, #tpu.memory_space<vmem>>, vector<1x24x36xbf16>
    %2 = vector.shape_cast %1 : vector<1x24x36xbf16> to vector<24x36xbf16>
    %cst = arith.constant dense<0.000000e+00> : vector<32x36xf32>
    %3 = tpu.matmul %0, %2, %cst {dimension_numbers = #tpu.dot_dimension_numbers<[1], [0], [0], [1], [0, 0, 1, 1], [], []>} : vector<32x24xbf16>, vector<24x36xbf16>, vector<32x36xf32> -> vector<32x36xf32>
    %4 = arith.truncf %3 : vector<32x36xf32> to vector<32x36xbf16>
    %c0_4 = arith.constant 0 : index
    %c0_5 = arith.constant 0 : index
    %5 = vector.load %arg3[%c0_4, %c0_5] : memref<36x48xbf16, #tpu.memory_space<vmem>>, vector<36x48xbf16>
    %cst_6 = arith.constant dense<0.000000e+00> : vector<32x48xf32>
    %6 = tpu.matmul %4, %5, %cst_6 {dimension_numbers = #tpu.dot_dimension_numbers<[1], [0], [0], [1], [0, 0, 1, 1], [], []>} : vector<32x36xbf16>, vector<36x48xbf16>, vector<32x48xf32> -> vector<32x48xf32>
    %7 = arith.truncf %6 : vector<32x48xf32> to vector<32x48xbf16>
    %c0_7 = arith.constant 0 : index
    %c0_8 = arith.constant 0 : index
    %c0_9 = arith.constant 0 : index
    %8 = vector.load %arg4[%c0_7, %c0_8, %c0_9] : memref<1x32x48xbf16, #tpu.memory_space<vmem>>, vector<1x32x48xbf16>
    %9 = vector.shape_cast %8 : vector<1x32x48xbf16> to vector<32x48xbf16>
    %10 = vector.shape_cast %7 : vector<32x48xbf16> to vector<1x32x48xbf16>
    tpu.vector_store %arg4[%c0_7, %c0_8, %c0_9], %10 {strides = array<i32>} : memref<1x32x48xbf16, #tpu.memory_space<vmem>>, vector<1x32x48xbf16>,
    return
  }
  func.func @transform_0(%arg0: i32) -> (i32, i32, i32) {
    %c0_i32 = arith.constant 0 : i32
    %c0_i32_0 = arith.constant 0 : i32
    %c0_i32_1 = arith.constant 0 : i32
    return %arg0, %c0_i32, %c0_i32_0 : i32, i32, i32
  }
  func.func @transform_1(%arg0: i32) -> (i32, i32) {
    %c0_i32 = arith.constant 0 : i32
    %c0_i32_0 = arith.constant 0 : i32
    %c0_i32_1 = arith.constant 0 : i32
    return %c0_i32, %c0_i32_0 : i32, i32
  }
  func.func @transform_2(%arg0: i32) -> (i32, i32) {
    %c0_i32 = arith.constant 0 : i32
    %c0_i32_0 = arith.constant 0 : i32
    %c0_i32_1 = arith.constant 0 : i32
    return %c0_i32, %c0_i32_0 : i32, i32
  }
  func.func @transform_3(%arg0: i32) -> (i32, i32, i32) {
    %c0_i32 = arith.constant 0 : i32
    %c0_i32_0 = arith.constant 0 : i32
    %c0_i32_1 = arith.constant 0 : i32
    return %arg0, %c0_i32, %c0_i32_0 : i32, i32, i32
  }
}

</mosaic_0001>

<bundles_post_ra>
// kernel: tpu_custom_call.1
= control target key start
LH: loop header
LB: loop body
LE: loop exit
PB: predicated region body
PF: predicated region fallthrough
CT: control target
= control target key end

     0   :  { %8 = vsyncpa [#allocation3], 0  ;;  %s872_s0 = inlined_call_operand.hbm [shape: bf16[6,24,36], index: 0, kind: input, shape index: {}]   ;;  %s873_s1 = inlined_call_operand.vmem [shape: bf16[32,24], index: 1, kind: input, shape index: {}]   ;;  %s874_s2 = inlined_call_operand.vmem [shape: bf16[36,48], index: 2, kind: input, shape index: {}]   ;;  %s875_s3 = inlined_call_operand.hbm [shape: bf16[6,32,48], index: 3, kind: output, shape index: {}]  }
   0x1   :  { %10 = vsyncpa [#allocation3 + $0x1], 0 }
   0x2   :  { %11 = vsyncpa [#allocation4], 0 }
   0x3   :  { %13 = vsyncpa [#allocation4 + $0x1], 0  ;;  %s706_s12 = smov 0   ;;  %s708_s13 = smov 0  }
   0x4   :  { %s710_s14 = smov 0   ;;  %s712_s15 = smov 0  }
   0x5 LB: > { %s727_s16 = sadd.s32 4294967295, %s678_s15   ;;  %s466_s17 = sadd.s32 4294967294, %s678_s15   ;;  %s678_s15 = sphi %s712_s15, %s888_s15   ;;  %s674_s14 = sphi %s710_s14, %s887_s14   ;;  %s670_s13 = sphi %s708_s13, %s886_s13   ;;  %s666_s12 = sphi %s706_s12, %s885_s12  }
   0x6   : > { %s731_s18 = sadd.s32 1, %s678_s15   ;;  %s26_s19 = sadd.s32 1, %s674_s14 }
   0x7   : > { %s23_s20 = ssub.s32 %s678_s15, %s731_s18  ;;  %p33_p0 = scmp.ne.s32.totalorder %s674_s14, %s670_s13 }
   0x8   : > { %p24_p1 = scmp.eq.s32.totalorder %s23_s20, 0  ;;  %p34_p2 = scmp.eq.s32.totalorder %s678_s15, 0 }
   0x9   : > { %p39_p3 = scmp.ne.s32.totalorder %s670_s13, %s666_s12  ;;  %p40_p4 = scmp.eq.s32.totalorder %s727_s16, 0 }
   0xa   : > { %s743_s21 = scalar_select %p24_p1, %s674_s14, %s26_s19  }
   0xb   : > { %p35_p5 = por %p34_p2, %p33_p0  ;;  %p745_p6 = por %p40_p4, %p39_p3 }
   0xc   : > { %p105_p7 = scmp.eq.s32.totalorder %s727_s16, 5  ;;  %p111_p8 = scmp.eq.s32.totalorder %s466_s17, 5 }
   0xd   : > { %s878_s22 = scalar_select %p745_p6, 1, 0 }
   0xe   : > { %p541_p9 = scmp.lt.s32.totalorder %s678_s15, 6  ;;  %p751_p10 = por %p105_p7, %p33_p0 }
   0xf   : > { %p755_p11 = por %p111_p8, %p39_p3  ;;  %s137_s25 = sand.u32 1, %s674_s14  }
  0x10   : > { %s879_s23 = scalar_select %p751_p10, 1, 0 }
  0x11   : > { %s880_s24 = scalar_select %p755_p11, 1, 0 }
  0x12   : > { %s527_s26 = smul.u32 192, %s678_s15  ;;  %p766_p12 = pnand %p541_p9, %p35_p5 }
  0x13   : > { %s526_s27 = smul.u32 12, %s137_s25  ;;  %s772_s7 = scalar_lea.sflag [#allocation3], %s137_s25 }
  0x14   : > { %s764_s30 = scalar_lea.hbm %s872_s0, %s527_s26  ;;  %p588_p0 = pneg %p766_p12 }
  0x15   : > { %s141_s5 = scalar_lea.vmem [#allocation2], %s526_s27  ;;  %s586_s8 = scalar_lea.hbm %s764_s30, 192 }
  0x16   : > { %s148_s6 = sshll.u32 %s141_s5, 4  ;;  %p587_p13 = scmp.ne.s32.totalorder %s764_s30, %s586_s8  ;;  %s770_s6 = int_to_ptr.vmem [resolvable:$true] %s148_s6 }
  0x17   : > { %s591_s11 = scalar_lea.hbm %s872_s0, 1152  ;;  %p592_p3 = scmp.lt.s32.totalorder %s764_s30, %s872_s0 }
  0x18   : > { %p589_p1 = pnand %p588_p0, %p587_p13  ;;  %p593_p4 = scmp.lt.s32.totalorder %s591_s11, %s586_s8 }
  0x1a   : > { %p590_p2 = pneg %p589_p1  ;;  %p594_p5 = por %p593_p4, %p592_p3 }
  0x1c   : > { %p595_p7 = pnand %p594_p5, %p590_p2 }
  0x1e   : > { %598 = shalt.err (!%p595_p7)
}
  0x1f   : > { %s599_s20 = scalar_lea.vmem %s770_s6, 192  ;;  %s680_s25 = smov [#allocation2]  }
  0x20   : > { %p600_p8 = scmp.ne.s32.totalorder %s770_s6, %s599_s20  ;;  %s604_s26 = sshll.u32 %s680_s25, 4  ;;  %s605_s26 = int_to_ptr.vmem [resolvable:$false] %s604_s26 }
  0x21   : > { %s606_s27 = scalar_lea.vmem %s605_s26, 384  ;;  %p607_p1 = scmp.lt.s32.totalorder %s770_s6, %s605_s26 }
  0x22   : > { %p602_p9 = pnand %p600_p8, %p588_p0  ;;  %p608_p11 = scmp.lt.s32.totalorder %s606_s27, %s599_s20 }
  0x24   : > { %p603_p13 = pneg %p602_p9  ;;  %p609_p10 = por %p608_p11, %p607_p1 }
  0x26   : > { %p610_p6 = pnand %p609_p10, %p603_p13 }
  0x28   : > { %613 = shalt.err (!%p610_p6)
}
  0x29   : > { %s681_s28 = smov 64   ;;  %s682_s29 = smov 4  }
  0x2a   : > { %536 = dma.hbm_to_vmem [thread:$0]  (!%p766_p12), %s764_s30, 192, %s770_s6, %s772_s7, %s681_s28, %s681_s28, %s682_s29  }
  0x2b   : > { %p470_p0 = scmp.ge.s32.totalorder %s678_s15, 1  ;;  %p156_p2 = scmp.lt.s32.totalorder %s678_s15, 7 }
  0x2d   : > { %p157_p3 = pnand %p470_p0, %p156_p2 }
  0x2e   : > { %s796_s5 = sand.u32 (!%p157_p3), 1, %s670_s13   ;;  %p882_p6 = scmp.ne.s32.totalorder (!%p157_p3), %s878_s22, 0 }
  0x2f   : > { %160 = sbr.rel (%p157_p3) target bundleno = 479 (0x1df), region = 32  ;;  %s163_s9 = scalar_lea.sflag (!%p157_p3), [#allocation3], %s796_s5 }
  0x30   : > { %s528_s8 = smul.u32 (!%p157_p3), 12, %s796_s5 }
  0x32   : > { %s166_s10 = scalar_lea.vmem (!%p157_p3), [#allocation2], %s528_s8 }
  0x34   : > { %657 = dma.done.wait (%p882_p6), %s163_s9, 192  }
  0x35   : > { %659 = vsyncadd (%p882_p6), %s163_s9, 4294967104  ;;  %vm223_vm0 = vcmask 1043456   ;;  %v579_v0 = vld [vmem:[%s166_s10 + $0x8] ss:$0 sps:$4 sm:$0xff]   ;;  %v580_v1 = vld [vmem:[%s166_s10] sm:$0xff]   ;;  %vm216_vm1 = vcmask 195584  }
  0x36   : > { %524 = vmatprep.subr.msk.bf16.mxu0 %vm223_vm0, %v579_v0  ;;  %v225_v2 = vsel %vm223_vm0, %v579_v0, 0  ;;  %v581_v3 = vld [vmem:[%s873_s1] sm:$0xff]   ;;  %vm305_vm2 = vcmask 1041408   ;;  %v583_v4 = vld [vmem:[%s874_s2 + $0x10] ss:$0 sps:$4 sm:$0x33]  }
  0x37   : > { %507 = vmatpush3.bf16.msra.mxu0 %v225_v2  ;;  %510 = vmatprep.mubr.msk.bf16.mxu0 %vm216_vm1, %v581_v3  ;;  %v582_v5 = vld [vmem:[%s873_s1 + $0x8] sm:$0xff]   ;;  %v307_v6 = vsel %vm305_vm2, %v583_v4, 0  ;;  %v585_v8 = vld [vmem:[%s874_s2] sm:$0xff]   ;;  %vm298_vm3 = vcmask 293888   ;;  %s471_s26 = sshll.u32 %s796_s5, 4  ;;  %vm374_vm4 = vcmask 388096  }
  0x38   : > { %508 = vmatprep.subr.bf16.mxu0 %v580_v1  ;;  %525 = vmatprep.subr.msk.bf16.mxu1 %vm305_vm2, %v583_v4  ;;  %v584_v7 = vld [vmem:[%s874_s2 + $0x8] sm:$0xff]   ;;  %s188_s27 = scalar_lea.vmem [#allocation5], %s471_s26  ;;  %s496_s29 = sshll.u32 %s727_s16, 8 }
  0x39   : > { %515 = vmatpush3.bf16.msra.mxu1 %v307_v6  ;;  %s393_s28 = sshll.u32 %s188_s27, 4  ;;  %s828_s10 = scalar_lea.hbm %s875_s3, %s496_s29  ;;  %s822_s28 = int_to_ptr.vmem [resolvable:$true] %s393_s28 }
  0x3a   : > { %516 = vmatprep.subr.bf16.mxu1 %v584_v7  ;;  %s380_s16 = scalar_lea.sflag [#allocation4], %s796_s5  ;;  %s614_s30 = scalar_lea.vmem %s822_s28, 256 }
  0x3b   : > { %509 = vmatpush3.bf16.msra.mxu0 %v580_v1  ;;  %p615_p10 = scmp.ne.s32.totalorder %s822_s28, %s614_s30  ;;  %p883_p11 = scmp.ne.s32.totalorder %s879_s23, 0 }
  0x3c   : > { %s683_s4 = smov [#allocation5]  }
  0x3d   : > { %517 = vmatpush3.bf16.msra.mxu1 %v584_v7  ;;  %p616_p12 = pnand %p615_p10, %p883_p11  ;;  %s618_s6 = sshll.u32 %s683_s4, 4  ;;  %s619_s6 = int_to_ptr.vmem [resolvable:$false] %s618_s6 }
  0x3e   : > { %511 = vmatmul.mubr.msk.bf16.vlgmr.msra.gmra.mxu0 %vm216_vm1, %v582_v5  ;;  %518 = vmatprep.subr.bf16.mxu1 %v585_v8  ;;  %s620_s7 = scalar_lea.vmem %s619_s6, 512  ;;  %p621_p5 = scmp.lt.s32.totalorder %s822_s28, %s619_s6 }
  0x3f   : > { %p617_p4 = pneg %p616_p12  ;;  %p622_p7 = scmp.lt.s32.totalorder %s620_s7, %s614_s30 }
  0x41   : > { %519 = vmatpush3.bf16.msra.mxu1 %v585_v8  ;;  %p623_p8 = por %p622_p7, %p621_p5 }
  0x43   : > { %p624_p9 = pnand %p623_p8, %p617_p4 }
  0xfe   : > { %v512_v9 = vpop.f32.mrf.mxu0 }
 0x100   : > { %v261_v10 = vpop.f32.mrf.mxu0 }
 0x102   : > { %v513_v11 = vpop.f32.mrf.mxu0 }
 0x103   : > { %v277_v14 = vpack.c.bf16 %v513_v11, %v512_v9 }
 0x104   : > { %v264_v12 = vpop.f32.mrf.mxu0 }
 0x105   : > { %v276_v13 = vpack.c.bf16 %v264_v12, %v261_v10 }
 0x107   : > { %520 = vmatprep.mubr.msk.bf16.mxu1 %vm298_vm3, %v276_v13 }
 0x108   : > { %521 = vmatmul.mubr.msk.bf16.vlgmr.msra.gmra.mxu1 %vm298_vm3, %v277_v14 }
 0x1c8   : > { %v522_v15 = vpop.f32.mrf.mxu1 }
 0x1c9   : > { %v494_v16 = vpack.c.bf16 %v522_v15, %v522_v15 }
 0x1ca   : > { %v343_v17 = vpop.f32.mrf.mxu1 }
 0x1cb   : > { %377 = vst.msk [vmem:[%s188_s27 + $0x8] sm:$0xf] %vm374_vm4, %v494_v16  ;;  %v492_v18 = vpack.c.bf16 %v343_v17, %v343_v17 }
 0x1cc   : > { %v523_v19 = vpop.f32.mrf.mxu1 }
 0x1cd   : > { %375 = vst.msk [vmem:[%s188_s27] sm:$0xf] %vm374_vm4, %v492_v18  ;;  %v495_v20 = vpack.c.bf16 %v523_v19, %v523_v19 }
 0x1ce   : > { %v346_v21 = vpop.f32.mrf.mxu1 }
 0x1cf   : > { %378 = vst.msk [vmem:[%s188_s27 + $0xc] sm:$0xf] %vm374_vm4, %v495_v20  ;;  %v493_v22 = vpack.c.bf16 %v346_v21, %v346_v21 }
 0x1d1   : > { %376 = vst.msk [vmem:[%s188_s27 + $0x4] sm:$0xf] %vm374_vm4, %v493_v22 }
 0x1d2   : > { %627 = shalt.err (!%p624_p9)
}
 0x1d3   : > { %s628_s22 = scalar_lea.hbm %s828_s10, 256  ;;  %s632_s19 = scalar_lea.hbm %s875_s3, 1536 }
 0x1d4   : > { %p629_p13 = scmp.ne.s32.totalorder %s828_s10, %s628_s22  ;;  %p633_p2 = scmp.lt.s32.totalorder %s828_s10, %s875_s3 }
 0x1d5   : > { %p634_p3 = scmp.lt.s32.totalorder %s632_s19, %s628_s22 }
 0x1d6   : > { %p630_p1 = pnand %p629_p13, %p883_p11 }
 0x1d7   : > { %p635_p6 = por %p634_p3, %p633_p2 }
 0x1d8   : > { %p631_p0 = pneg %p630_p1 }
 0x1da   : > { %p636_p10 = pnand %p635_p6, %p631_p0 }
 0x1dc   : > { %639 = shalt.err (!%p636_p10)
}
 0x1dd   : > { %s684_s26 = smov 64   ;;  %s685_s27 = smov 4  }
 0x1de   : > { %531 = dma.vmem_to_hbm [thread:$0]  (%p883_p11), %s822_s28, 256, %s828_s10, %s380_s16, %s684_s26, %s684_s26, %s685_s27  }
 0x1df PF: > { %p542_p12 = scmp.ge.s32.totalorder %s678_s15, 2  ;;  %s408_s29 = sand.u32 1, %s666_s12  }
 0x1e0   : > { %p884_p4 = scmp.ne.s32.totalorder %s880_s24, 0  ;;  %s409_s8 = scalar_lea.sflag [#allocation4], %s408_s29 }
 0x1e2   : > { %p538_p5 = pnand %p542_p12, %p884_p4 }
 0x1e4   : > { %p539_p7 = pneg %p538_p5 }
 0x1e6   : > { %661 = dma.done.wait (%p539_p7), %s409_s8, 256  }
 0x1e7   : > { %663 = vsyncadd (%p539_p7), %s409_s8, 4294967040  ;;  %p16_p8 = scmp.ge.s32.totalorder %s731_s18, 8   ;;  %s885_s12 = smov %s670_s13 }
 0x1e8   : > { %s886_s13 = smov %s674_s14  ;;  %s887_s14 = smov %s743_s21 }
 0x1e9   : > { %s888_s15 = smov %s731_s18  ;;  %18 = sbr.rel (!%p16_p8) target bundleno = 5 (0x5), region = 77 }
 0x1ee   :  { %414 = vsyncpa [#allocation3], 1 }
 0x1ef   :  { %416 = vsyncpa [#allocation3 + $0x1], 1 }
 0x1f0   :  { %417 = vsyncpa [#allocation4], 1 }
 0x1f1   :  { %419 = vsyncpa [#allocation4 + $0x1], 1 }

</bundles_post_ra>
